<compile_context>
chip_gen: v6e
topology: v6e:2x2x1
jax: 0.10.0
libtpu: 0.0.40
codegen_flags: <defaults>
</compile_context>

<pallas_src>
import jax
import jax.numpy as jnp
from jax import lax
from jax.experimental import pallas as pl
from jax.experimental.pallas import tpu as pltpu


def _lstm_model_kernel(comb_ref, hc0_ref, w_ref, fcw_ref, out_ref, hn_ref, cn_ref):
    """Whole forward pass in one kernel; every tensor is tiny and VMEM-resident."""
    L, KI = comb_ref.shape            # combined = cat([category, input], dim=1)
    H = hc0_ref.shape[1]
    H4 = w_ref.shape[1]               # 4*H (packed gate axis, lane-dense = 128 for H=32)

    # ---- packed weight slab (all last-dim 4H = lane-dense) ----
    # rows [0:H]        = W_hh.T            (i/f/o columns pre-scaled by 0.5)
    # rows [H:H+KI]     = Wc.T @ W_ih.T     (context folded into gate projection, scaled)
    # row  [H+KI]       = ctx_b@W_ih.T + b_ih + b_hh  (scaled)
    whh = w_ref[0:H, :]                                            # (H, 4H)
    a_in = w_ref[H:H + KI, :]                                      # (K+I, 4H)
    b_all = w_ref[H + KI:H + KI + 1, :]                            # (1, 4H)

    # ---- input-to-gate projections for all timesteps (one lane-dense matmul) ----
    gx = (jnp.dot(comb_ref[...], a_in, preferred_element_type=jnp.float32)
          + b_all)                                                 # (L, 4H)

    h = hc0_ref[0:1, :]                                            # (1, H)
    c = hc0_ref[1:2, :]                                            # (1, H)

    # Constant lane mask (hoisted): g-gate lanes [2H:3H) keep tanh; i/f/o lanes get the
    # sigmoid-via-tanh fixup 0.5*t + 0.5 (their pre-activations were pre-scaled by 0.5).
    lane = lax.broadcasted_iota(jnp.int32, (1, H4), 1)
    is_g = jnp.logical_and(lane >= 2 * H, lane < 3 * H)

    # ---- fully unrolled recurrence; h/c carried in vregs, static indices everywhere ----
    hs = []
    for t in range(L):
        pre = gx[t:t + 1, :] + jnp.dot(h, whh, preferred_element_type=jnp.float32)  # (1,4H)
        tnh = jnp.tanh(pre)                                        # single EUP pass per step
        gates = jnp.where(is_g, tnh, 0.5 * tnh + 0.5)              # VPU fixup (free slots)
        i_g = gates[:, 0 * H:1 * H]
        f_g = gates[:, 1 * H:2 * H]
        g_g = gates[:, 2 * H:3 * H]
        o_g = gates[:, 3 * H:4 * H]
        c = f_g * c + i_g * g_g
        h = o_g * jnp.tanh(c)
        hs.append(h)

    # ---- batched epilogue: fc + LogSoftmax(dim=1) off the carry chain ----
    # TODO(synk): nn.Dropout(0.1) is identity in eval mode; training-mode dropout not modeled.
    hs_mat = jnp.concatenate(hs, axis=0)                           # (L, H), stays in vregs
    fcw = fcw_ref[...]                                             # (H+1, O): [W_fc.T ; b_fc]
    logits = (jnp.dot(hs_mat, fcw[0:H, :], preferred_element_type=jnp.float32)
              + fcw[H:H + 1, :])                                   # (L, O)
    z = logits - jnp.max(logits, axis=1, keepdims=True)
    out_ref[...] = z - jnp.log(jnp.sum(jnp.exp(z), axis=1, keepdims=True))

    hn_ref[...] = h
    cn_ref[...] = c


def prepare_params(params):
    """One-time conversion of PyTorch-convention weights into packed kernel slabs.

    Hoisted out of the per-call forward: transposes, the context-Linear fold
    (A = Wc.T @ Wih.T), the b_ih + b_hh pre-add and the 0.5 pre-scaling of the
    i/f/o gate columns (for the single-tanh packed activation) all happen once.
    Everything with a 4H last dim is lane-dense (128 lanes for H=32).
    """
    cw = params["context_w"]                     # (I, K+I), PyTorch (out, in) layout
    I = cw.shape[0]
    K = cw.shape[1] - I
    H = params["w_hh"].shape[1]
    O = params["fc_w"].shape[0]

    wih_t = params["w_ih"].T                     # (I, 4H)
    whh_t = params["w_hh"].T                     # (H, 4H)

    # Fold the context Linear into the gate projection (exact up to fp re-association).
    a_in = jnp.dot(cw.T, wih_t)                  # (K+I, 4H)
    b_all = (jnp.dot(params["context_b"], wih_t)
             + params["b_ih"] + params["b_hh"])  # (4H,)

    # Pre-scale i/f/o gate columns by 0.5 so sigmoid(x) = 0.5*tanh(x/2)+0.5 needs one tanh.
    half = jnp.full((H,), 0.5, jnp.float32)
    one = jnp.ones((H,), jnp.float32)
    scale = jnp.concatenate([half, half, one, half])               # gate order i, f, g, o

    w_slab = jnp.concatenate(
        [whh_t * scale,                          # (H, 4H)
         a_in * scale,                           # (K+I, 4H)
         (b_all * scale).reshape(1, 4 * H)], axis=0)               # -> (H+K+I+1, 4H)

    fc_slab = jnp.concatenate(
        [params["fc_w"].T,                       # (H, O)
         params["fc_b"].reshape(1, O)], axis=0)                    # -> (H+1, O)

    return {"w": w_slab, "fc": fc_slab}


@jax.jit
def lstm_model_forward(category, x, hidden, cell, packed):
    L = x.shape[0]
    H = hidden.shape[1]
    O = packed["fc"].shape[1]

    combined = jnp.concatenate([category, x], axis=1)              # (L, K+I)
    hc0 = jnp.concatenate([hidden, cell], axis=0)                  # (2, H)

    vmem = pl.BlockSpec(memory_space=pltpu.MemorySpace.VMEM)
    out, hn, cn = pl.pallas_call(
        _lstm_model_kernel,
        out_shape=(
            jax.ShapeDtypeStruct((L, O), jnp.float32),
            jax.ShapeDtypeStruct((1, H), jnp.float32),
            jax.ShapeDtypeStruct((1, H), jnp.float32),
        ),
        in_specs=[vmem] * 4,
        out_specs=(vmem, vmem, vmem),
    )(combined, hc0, packed["w"], packed["fc"])
    return out, hn, cn


def reference_forward(category, x, hidden, cell, params):
    """Pure-JAX reference matching the PyTorch module (eval mode)."""
    H = hidden.shape[1]
    hp = lax.Precision.HIGHEST
    combined = jnp.concatenate([category, x], axis=1)
    ctx = jnp.dot(combined, params["context_w"].T, precision=hp) + params["context_b"]
    wih_t = params["w_ih"].T
    whh_t = params["w_hh"].T
    b = (params["b_ih"] + params["b_hh"]).reshape(1, -1)

    def step(carry, xt):
        h, c = carry
        gates = (jnp.dot(xt.reshape(1, -1), wih_t, precision=hp)
                 + jnp.dot(h, whh_t, precision=hp) + b)
        i = jax.nn.sigmoid(gates[:, 0:H])
        f = jax.nn.sigmoid(gates[:, H:2 * H])
        g = jnp.tanh(gates[:, 2 * H:3 * H])
        o = jax.nn.sigmoid(gates[:, 3 * H:4 * H])
        c = f * c + i * g
        h = o * jnp.tanh(c)
        return (h, c), h[0]

    (hn, cn), hs = lax.scan(step, (hidden, cell), ctx)
    logits = jnp.dot(hs, params["fc_w"].T, precision=hp) + params["fc_b"]
    out = jax.nn.log_softmax(logits, axis=1)
    return out, hn, cn


def init_params(key, input_size, hidden_size, output_size, k_categories):
    ks = jax.random.split(key, 8)
    s = 0.1
    return {
        "context_w": s * jax.random.normal(ks[0], (input_size, k_categories + input_size), jnp.float32),
        "context_b": s * jax.random.normal(ks[1], (input_size,), jnp.float32),
        "w_ih": s * jax.random.normal(ks[2], (4 * hidden_size, input_size), jnp.float32),
        "w_hh": s * jax.random.normal(ks[3], (4 * hidden_size, hidden_size), jnp.float32),
        "b_ih": s * jax.random.normal(ks[4], (4 * hidden_size,), jnp.float32),
        "b_hh": s * jax.random.normal(ks[5], (4 * hidden_size,), jnp.float32),
        "fc_w": s * jax.random.normal(ks[6], (output_size, hidden_size), jnp.float32),
        "fc_b": s * jax.random.normal(ks[7], (output_size,), jnp.float32),
    }


if __name__ == "__main__":
    # Small shapes consistent with the module's forward.
    L = 8            # sequence length
    K = 4            # k_categories
    I = 16           # input_size
    H = 32           # hidden_size
    O = 16           # output_size

    key = jax.random.PRNGKey(0)
    k_cat, k_x, k_p = jax.random.split(key, 3)

    # One-hot category broadcast along the sequence (as in trainWord usage).
    category = jnp.tile(jax.nn.one_hot(jnp.array([1]), K, dtype=jnp.float32), (L, 1))
    x = jax.random.normal(k_x, (L, I), jnp.float32)
    hidden = jnp.zeros((1, H), jnp.float32)   # initHidden()
    cell = jnp.zeros((1, H), jnp.float32)

    params = init_params(k_p, I, H, O, K)
    packed = prepare_params(params)           # one-time weight prep (hoisted out of forward)

    out, hn, cn = lstm_model_forward(category, x, hidden, cell, packed)
    jax.block_until_ready((out, hn, cn))

    # Correctness vs pure-JAX reference of the PyTorch module.
    ref_out, ref_hn, ref_cn = reference_forward(category, x, hidden, cell, params)
    assert out.shape == (L, O) and hn.shape == (1, H) and cn.shape == (1, H)
    assert bool(jnp.allclose(out, ref_out, atol=1e-3, rtol=1e-3))
    assert bool(jnp.allclose(hn, ref_hn, atol=1e-3, rtol=1e-3))
    assert bool(jnp.allclose(cn, ref_cn, atol=1e-3, rtol=1e-3))
    # log-softmax rows should sum to ~1 in prob space
    assert bool(jnp.allclose(jnp.sum(jnp.exp(out), axis=1), 1.0, atol=1e-4))
    print("KERNEL_OK")
</pallas_src>

<mosaic_0001>
module attributes {stable_mosaic.version = 11 : i64} {
  func.func @_lstm_model_kernel(%arg0: memref<8x20xf32, #tpu.memory_space<vmem>>, %arg1: memref<2x32xf32, #tpu.memory_space<vmem>>, %arg2: memref<53x128xf32, #tpu.memory_space<vmem>>, %arg3: memref<33x16xf32, #tpu.memory_space<vmem>>, %arg4: memref<8x16xf32, #tpu.memory_space<vmem>>, %arg5: memref<1x32xf32, #tpu.memory_space<vmem>>, %arg6: memref<1x32xf32, #tpu.memory_space<vmem>>) attributes {dimension_semantics = [], scalar_prefetch = 0 : i64, scratch_operands = 0 : i64, tpu.core_type = #tpu.core_type<tc>} {
    %c0 = arith.constant 0 : index
    %c0_0 = arith.constant 0 : index
    %0 = vector.load %arg2[%c0, %c0_0] : memref<53x128xf32, #tpu.memory_space<vmem>>, vector<32x128xf32>
    %c32 = arith.constant 32 : index
    %c0_1 = arith.constant 0 : index
    %1 = vector.load %arg2[%c32, %c0_1] : memref<53x128xf32, #tpu.memory_space<vmem>>, vector<20x128xf32>
    %c52 = arith.constant 52 : index
    %c0_2 = arith.constant 0 : index
    %2 = vector.load %arg2[%c52, %c0_2] : memref<53x128xf32, #tpu.memory_space<vmem>>, vector<1x128xf32>
    %c0_3 = arith.constant 0 : index
    %c0_4 = arith.constant 0 : index
    %3 = vector.load %arg0[%c0_3, %c0_4] : memref<8x20xf32, #tpu.memory_space<vmem>>, vector<8x20xf32>
    %cst = arith.constant dense<0.000000e+00> : vector<8x128xf32>
    %4 = tpu.matmul %3, %1, %cst {dimension_numbers = #tpu.dot_dimension_numbers<[1], [0], [0], [1], [0, 0, 1, 1], [], []>} : vector<8x20xf32>, vector<20x128xf32>, vector<8x128xf32> -> vector<8x128xf32>
    %5 = vector.broadcast %2 : vector<1x128xf32> to vector<8x128xf32>
    %6 = arith.addf %4, %5 : vector<8x128xf32>
    %c0_5 = arith.constant 0 : index
    %c0_6 = arith.constant 0 : index
    %7 = vector.load %arg1[%c0_5, %c0_6] : memref<2x32xf32, #tpu.memory_space<vmem>>, vector<1x32xf32>
    %c1 = arith.constant 1 : index
    %c0_7 = arith.constant 0 : index
    %8 = vector.load %arg1[%c1, %c0_7] : memref<2x32xf32, #tpu.memory_space<vmem>>, vector<1x32xf32>
    %9 = tpu.iota {dimensions = array<i32: 1>} : vector<1x128xi32>
    %c64_i32 = arith.constant 64 : i32
    %10 = vector.broadcast %c64_i32 : i32 to vector<1x128xi32>
    %11 = arith.cmpi sge, %9, %10 : vector<1x128xi32>
    %c96_i32 = arith.constant 96 : i32
    %12 = vector.broadcast %c96_i32 : i32 to vector<1x128xi32>
    %13 = arith.cmpi slt, %9, %12 : vector<1x128xi32>
    %14 = arith.andi %11, %13 : vector<1x128xi1>
    %15 = vector.extract_strided_slice %6 {offsets = [0, 0], sizes = [1, 128], strides = [1, 1]} : vector<8x128xf32> to vector<1x128xf32>
    %cst_8 = arith.constant dense<0.000000e+00> : vector<1x128xf32>
    %16 = tpu.matmul %7, %0, %cst_8 {dimension_numbers = #tpu.dot_dimension_numbers<[1], [0], [0], [1], [0, 0, 1, 1], [], []>} : vector<1x32xf32>, vector<32x128xf32>, vector<1x128xf32> -> vector<1x128xf32>
    %17 = arith.addf %15, %16 : vector<1x128xf32>
    %18 = math.tanh %17 : vector<1x128xf32>
    %cst_9 = arith.constant 5.000000e-01 : f32
    %19 = vector.broadcast %cst_9 : f32 to vector<1x128xf32>
    %20 = arith.mulf %19, %18 : vector<1x128xf32>
    %cst_10 = arith.constant 5.000000e-01 : f32
    %21 = vector.broadcast %cst_10 : f32 to vector<1x128xf32>
    %22 = arith.addf %20, %21 : vector<1x128xf32>
    %23 = arith.select %14, %18, %22 : vector<1x128xi1>, vector<1x128xf32>
    %24 = vector.extract_strided_slice %23 {offsets = [0, 0], sizes = [1, 32], strides = [1, 1]} : vector<1x128xf32> to vector<1x32xf32>
    %25 = vector.extract_strided_slice %23 {offsets = [0, 32], sizes = [1, 32], strides = [1, 1]} : vector<1x128xf32> to vector<1x32xf32>
    %26 = vector.extract_strided_slice %23 {offsets = [0, 64], sizes = [1, 32], strides = [1, 1]} : vector<1x128xf32> to vector<1x32xf32>
    %27 = vector.extract_strided_slice %23 {offsets = [0, 96], sizes = [1, 32], strides = [1, 1]} : vector<1x128xf32> to vector<1x32xf32>
    %28 = arith.mulf %25, %8 : vector<1x32xf32>
    %29 = arith.mulf %24, %26 : vector<1x32xf32>
    %30 = arith.addf %28, %29 : vector<1x32xf32>
    %31 = math.tanh %30 : vector<1x32xf32>
    %32 = arith.mulf %27, %31 : vector<1x32xf32>
    %33 = vector.extract_strided_slice %6 {offsets = [1, 0], sizes = [1, 128], strides = [1, 1]} : vector<8x128xf32> to vector<1x128xf32>
    %cst_11 = arith.constant dense<0.000000e+00> : vector<1x128xf32>
    %34 = tpu.matmul %32, %0, %cst_11 {dimension_numbers = #tpu.dot_dimension_numbers<[1], [0], [0], [1], [0, 0, 1, 1], [], []>} : vector<1x32xf32>, vector<32x128xf32>, vector<1x128xf32> -> vector<1x128xf32>
    %35 = arith.addf %33, %34 : vector<1x128xf32>
    %36 = math.tanh %35 : vector<1x128xf32>
    %cst_12 = arith.constant 5.000000e-01 : f32
    %37 = vector.broadcast %cst_12 : f32 to vector<1x128xf32>
    %38 = arith.mulf %37, %36 : vector<1x128xf32>
    %cst_13 = arith.constant 5.000000e-01 : f32
    %39 = vector.broadcast %cst_13 : f32 to vector<1x128xf32>
    %40 = arith.addf %38, %39 : vector<1x128xf32>
    %41 = arith.select %14, %36, %40 : vector<1x128xi1>, vector<1x128xf32>
    %42 = vector.extract_strided_slice %41 {offsets = [0, 0], sizes = [1, 32], strides = [1, 1]} : vector<1x128xf32> to vector<1x32xf32>
    %43 = vector.extract_strided_slice %41 {offsets = [0, 32], sizes = [1, 32], strides = [1, 1]} : vector<1x128xf32> to vector<1x32xf32>
    %44 = vector.extract_strided_slice %41 {offsets = [0, 64], sizes = [1, 32], strides = [1, 1]} : vector<1x128xf32> to vector<1x32xf32>
    %45 = vector.extract_strided_slice %41 {offsets = [0, 96], sizes = [1, 32], strides = [1, 1]} : vector<1x128xf32> to vector<1x32xf32>
    %46 = arith.mulf %43, %30 : vector<1x32xf32>
    %47 = arith.mulf %42, %44 : vector<1x32xf32>
    %48 = arith.addf %46, %47 : vector<1x32xf32>
    %49 = math.tanh %48 : vector<1x32xf32>
    %50 = arith.mulf %45, %49 : vector<1x32xf32>
    %51 = vector.extract_strided_slice %6 {offsets = [2, 0], sizes = [1, 128], strides = [1, 1]} : vector<8x128xf32> to vector<1x128xf32>
    %cst_14 = arith.constant dense<0.000000e+00> : vector<1x128xf32>
    %52 = tpu.matmul %50, %0, %cst_14 {dimension_numbers = #tpu.dot_dimension_numbers<[1], [0], [0], [1], [0, 0, 1, 1], [], []>} : vector<1x32xf32>, vector<32x128xf32>, vector<1x128xf32> -> vector<1x128xf32>
    %53 = arith.addf %51, %52 : vector<1x128xf32>
    %54 = math.tanh %53 : vector<1x128xf32>
    %cst_15 = arith.constant 5.000000e-01 : f32
    %55 = vector.broadcast %cst_15 : f32 to vector<1x128xf32>
    %56 = arith.mulf %55, %54 : vector<1x128xf32>
    %cst_16 = arith.constant 5.000000e-01 : f32
    %57 = vector.broadcast %cst_16 : f32 to vector<1x128xf32>
    %58 = arith.addf %56, %57 : vector<1x128xf32>
    %59 = arith.select %14, %54, %58 : vector<1x128xi1>, vector<1x128xf32>
    %60 = vector.extract_strided_slice %59 {offsets = [0, 0], sizes = [1, 32], strides = [1, 1]} : vector<1x128xf32> to vector<1x32xf32>
    %61 = vector.extract_strided_slice %59 {offsets = [0, 32], sizes = [1, 32], strides = [1, 1]} : vector<1x128xf32> to vector<1x32xf32>
    %62 = vector.extract_strided_slice %59 {offsets = [0, 64], sizes = [1, 32], strides = [1, 1]} : vector<1x128xf32> to vector<1x32xf32>
    %63 = vector.extract_strided_slice %59 {offsets = [0, 96], sizes = [1, 32], strides = [1, 1]} : vector<1x128xf32> to vector<1x32xf32>
    %64 = arith.mulf %61, %48 : vector<1x32xf32>
    %65 = arith.mulf %60, %62 : vector<1x32xf32>
    %66 = arith.addf %64, %65 : vector<1x32xf32>
    %67 = math.tanh %66 : vector<1x32xf32>
    %68 = arith.mulf %63, %67 : vector<1x32xf32>
    %69 = vector.extract_strided_slice %6 {offsets = [3, 0], sizes = [1, 128], strides = [1, 1]} : vector<8x128xf32> to vector<1x128xf32>
    %cst_17 = arith.constant dense<0.000000e+00> : vector<1x128xf32>
    %70 = tpu.matmul %68, %0, %cst_17 {dimension_numbers = #tpu.dot_dimension_numbers<[1], [0], [0], [1], [0, 0, 1, 1], [], []>} : vector<1x32xf32>, vector<32x128xf32>, vector<1x128xf32> -> vector<1x128xf32>
    %71 = arith.addf %69, %70 : vector<1x128xf32>
    %72 = math.tanh %71 : vector<1x128xf32>
    %cst_18 = arith.constant 5.000000e-01 : f32
    %73 = vector.broadcast %cst_18 : f32 to vector<1x128xf32>
    %74 = arith.mulf %73, %72 : vector<1x128xf32>
    %cst_19 = arith.constant 5.000000e-01 : f32
    %75 = vector.broadcast %cst_19 : f32 to vector<1x128xf32>
    %76 = arith.addf %74, %75 : vector<1x128xf32>
    %77 = arith.select %14, %72, %76 : vector<1x128xi1>, vector<1x128xf32>
    %78 = vector.extract_strided_slice %77 {offsets = [0, 0], sizes = [1, 32], strides = [1, 1]} : vector<1x128xf32> to vector<1x32xf32>
    %79 = vector.extract_strided_slice %77 {offsets = [0, 32], sizes = [1, 32], strides = [1, 1]} : vector<1x128xf32> to vector<1x32xf32>
    %80 = vector.extract_strided_slice %77 {offsets = [0, 64], sizes = [1, 32], strides = [1, 1]} : vector<1x128xf32> to vector<1x32xf32>
    %81 = vector.extract_strided_slice %77 {offsets = [0, 96], sizes = [1, 32], strides = [1, 1]} : vector<1x128xf32> to vector<1x32xf32>
    %82 = arith.mulf %79, %66 : vector<1x32xf32>
    %83 = arith.mulf %78, %80 : vector<1x32xf32>
    %84 = arith.addf %82, %83 : vector<1x32xf32>
    %85 = math.tanh %84 : vector<1x32xf32>
    %86 = arith.mulf %81, %85 : vector<1x32xf32>
    %87 = vector.extract_strided_slice %6 {offsets = [4, 0], sizes = [1, 128], strides = [1, 1]} : vector<8x128xf32> to vector<1x128xf32>
    %cst_20 = arith.constant dense<0.000000e+00> : vector<1x128xf32>
    %88 = tpu.matmul %86, %0, %cst_20 {dimension_numbers = #tpu.dot_dimension_numbers<[1], [0], [0], [1], [0, 0, 1, 1], [], []>} : vector<1x32xf32>, vector<32x128xf32>, vector<1x128xf32> -> vector<1x128xf32>
    %89 = arith.addf %87, %88 : vector<1x128xf32>
    %90 = math.tanh %89 : vector<1x128xf32>
    %cst_21 = arith.constant 5.000000e-01 : f32
    %91 = vector.broadcast %cst_21 : f32 to vector<1x128xf32>
    %92 = arith.mulf %91, %90 : vector<1x128xf32>
    %cst_22 = arith.constant 5.000000e-01 : f32
    %93 = vector.broadcast %cst_22 : f32 to vector<1x128xf32>
    %94 = arith.addf %92, %93 : vector<1x128xf32>
    %95 = arith.select %14, %90, %94 : vector<1x128xi1>, vector<1x128xf32>
    %96 = vector.extract_strided_slice %95 {offsets = [0, 0], sizes = [1, 32], strides = [1, 1]} : vector<1x128xf32> to vector<1x32xf32>
    %97 = vector.extract_strided_slice %95 {offsets = [0, 32], sizes = [1, 32], strides = [1, 1]} : vector<1x128xf32> to vector<1x32xf32>
    %98 = vector.extract_strided_slice %95 {offsets = [0, 64], sizes = [1, 32], strides = [1, 1]} : vector<1x128xf32> to vector<1x32xf32>
    %99 = vector.extract_strided_slice %95 {offsets = [0, 96], sizes = [1, 32], strides = [1, 1]} : vector<1x128xf32> to vector<1x32xf32>
    %100 = arith.mulf %97, %84 : vector<1x32xf32>
    %101 = arith.mulf %96, %98 : vector<1x32xf32>
    %102 = arith.addf %100, %101 : vector<1x32xf32>
    %103 = math.tanh %102 : vector<1x32xf32>
    %104 = arith.mulf %99, %103 : vector<1x32xf32>
    %105 = vector.extract_strided_slice %6 {offsets = [5, 0], sizes = [1, 128], strides = [1, 1]} : vector<8x128xf32> to vector<1x128xf32>
    %cst_23 = arith.constant dense<0.000000e+00> : vector<1x128xf32>
    %106 = tpu.matmul %104, %0, %cst_23 {dimension_numbers = #tpu.dot_dimension_numbers<[1], [0], [0], [1], [0, 0, 1, 1], [], []>} : vector<1x32xf32>, vector<32x128xf32>, vector<1x128xf32> -> vector<1x128xf32>
    %107 = arith.addf %105, %106 : vector<1x128xf32>
    %108 = math.tanh %107 : vector<1x128xf32>
    %cst_24 = arith.constant 5.000000e-01 : f32
    %109 = vector.broadcast %cst_24 : f32 to vector<1x128xf32>
    %110 = arith.mulf %109, %108 : vector<1x128xf32>
    %cst_25 = arith.constant 5.000000e-01 : f32
    %111 = vector.broadcast %cst_25 : f32 to vector<1x128xf32>
    %112 = arith.addf %110, %111 : vector<1x128xf32>
    %113 = arith.select %14, %108, %112 : vector<1x128xi1>, vector<1x128xf32>
    %114 = vector.extract_strided_slice %113 {offsets = [0, 0], sizes = [1, 32], strides = [1, 1]} : vector<1x128xf32> to vector<1x32xf32>
    %115 = vector.extract_strided_slice %113 {offsets = [0, 32], sizes = [1, 32], strides = [1, 1]} : vector<1x128xf32> to vector<1x32xf32>
    %116 = vector.extract_strided_slice %113 {offsets = [0, 64], sizes = [1, 32], strides = [1, 1]} : vector<1x128xf32> to vector<1x32xf32>
    %117 = vector.extract_strided_slice %113 {offsets = [0, 96], sizes = [1, 32], strides = [1, 1]} : vector<1x128xf32> to vector<1x32xf32>
    %118 = arith.mulf %115, %102 : vector<1x32xf32>
    %119 = arith.mulf %114, %116 : vector<1x32xf32>
    %120 = arith.addf %118, %119 : vector<1x32xf32>
    %121 = math.tanh %120 : vector<1x32xf32>
    %122 = arith.mulf %117, %121 : vector<1x32xf32>
    %123 = vector.extract_strided_slice %6 {offsets = [6, 0], sizes = [1, 128], strides = [1, 1]} : vector<8x128xf32> to vector<1x128xf32>
    %cst_26 = arith.constant dense<0.000000e+00> : vector<1x128xf32>
    %124 = tpu.matmul %122, %0, %cst_26 {dimension_numbers = #tpu.dot_dimension_numbers<[1], [0], [0], [1], [0, 0, 1, 1], [], []>} : vector<1x32xf32>, vector<32x128xf32>, vector<1x128xf32> -> vector<1x128xf32>
    %125 = arith.addf %123, %124 : vector<1x128xf32>
    %126 = math.tanh %125 : vector<1x128xf32>
    %cst_27 = arith.constant 5.000000e-01 : f32
    %127 = vector.broadcast %cst_27 : f32 to vector<1x128xf32>
    %128 = arith.mulf %127, %126 : vector<1x128xf32>
    %cst_28 = arith.constant 5.000000e-01 : f32
    %129 = vector.broadcast %cst_28 : f32 to vector<1x128xf32>
    %130 = arith.addf %128, %129 : vector<1x128xf32>
    %131 = arith.select %14, %126, %130 : vector<1x128xi1>, vector<1x128xf32>
    %132 = vector.extract_strided_slice %131 {offsets = [0, 0], sizes = [1, 32], strides = [1, 1]} : vector<1x128xf32> to vector<1x32xf32>
    %133 = vector.extract_strided_slice %131 {offsets = [0, 32], sizes = [1, 32], strides = [1, 1]} : vector<1x128xf32> to vector<1x32xf32>
    %134 = vector.extract_strided_slice %131 {offsets = [0, 64], sizes = [1, 32], strides = [1, 1]} : vector<1x128xf32> to vector<1x32xf32>
    %135 = vector.extract_strided_slice %131 {offsets = [0, 96], sizes = [1, 32], strides = [1, 1]} : vector<1x128xf32> to vector<1x32xf32>
    %136 = arith.mulf %133, %120 : vector<1x32xf32>
    %137 = arith.mulf %132, %134 : vector<1x32xf32>
    %138 = arith.addf %136, %137 : vector<1x32xf32>
    %139 = math.tanh %138 : vector<1x32xf32>
    %140 = arith.mulf %135, %139 : vector<1x32xf32>
    %141 = vector.extract_strided_slice %6 {offsets = [7, 0], sizes = [1, 128], strides = [1, 1]} : vector<8x128xf32> to vector<1x128xf32>
    %cst_29 = arith.constant dense<0.000000e+00> : vector<1x128xf32>
    %142 = tpu.matmul %140, %0, %cst_29 {dimension_numbers = #tpu.dot_dimension_numbers<[1], [0], [0], [1], [0, 0, 1, 1], [], []>} : vector<1x32xf32>, vector<32x128xf32>, vector<1x128xf32> -> vector<1x128xf32>
    %143 = arith.addf %141, %142 : vector<1x128xf32>
    %144 = math.tanh %143 : vector<1x128xf32>
    %cst_30 = arith.constant 5.000000e-01 : f32
    %145 = vector.broadcast %cst_30 : f32 to vector<1x128xf32>
    %146 = arith.mulf %145, %144 : vector<1x128xf32>
    %cst_31 = arith.constant 5.000000e-01 : f32
    %147 = vector.broadcast %cst_31 : f32 to vector<1x128xf32>
    %148 = arith.addf %146, %147 : vector<1x128xf32>
    %149 = arith.select %14, %144, %148 : vector<1x128xi1>, vector<1x128xf32>
    %150 = vector.extract_strided_slice %149 {offsets = [0, 0], sizes = [1, 32], strides = [1, 1]} : vector<1x128xf32> to vector<1x32xf32>
    %151 = vector.extract_strided_slice %149 {offsets = [0, 32], sizes = [1, 32], strides = [1, 1]} : vector<1x128xf32> to vector<1x32xf32>
    %152 = vector.extract_strided_slice %149 {offsets = [0, 64], sizes = [1, 32], strides = [1, 1]} : vector<1x128xf32> to vector<1x32xf32>
    %153 = vector.extract_strided_slice %149 {offsets = [0, 96], sizes = [1, 32], strides = [1, 1]} : vector<1x128xf32> to vector<1x32xf32>
    %154 = arith.mulf %151, %138 : vector<1x32xf32>
    %155 = arith.mulf %150, %152 : vector<1x32xf32>
    %156 = arith.addf %154, %155 : vector<1x32xf32>
    %157 = math.tanh %156 : vector<1x32xf32>
    %158 = arith.mulf %153, %157 : vector<1x32xf32>
    %159 = tpu.concatenate %32, %50, %68, %86, %104, %122, %140, %158 in 0 : vector<1x32xf32>, vector<1x32xf32>, vector<1x32xf32>, vector<1x32xf32>, vector<1x32xf32>, vector<1x32xf32>, vector<1x32xf32>, vector<1x32xf32> -> vector<8x32xf32>
    %c0_32 = arith.constant 0 : index
    %c0_33 = arith.constant 0 : index
    %160 = vector.load %arg3[%c0_32, %c0_33] : memref<33x16xf32, #tpu.memory_space<vmem>>, vector<33x16xf32>
    %161 = vector.extract_strided_slice %160 {offsets = [0, 0], sizes = [32, 16], strides = [1, 1]} : vector<33x16xf32> to vector<32x16xf32>
    %cst_34 = arith.constant dense<0.000000e+00> : vector<8x16xf32>
    %162 = tpu.matmul %159, %161, %cst_34 {dimension_numbers = #tpu.dot_dimension_numbers<[1], [0], [0], [1], [0, 0, 1, 1], [], []>} : vector<8x32xf32>, vector<32x16xf32>, vector<8x16xf32> -> vector<8x16xf32>
    %163 = vector.extract_strided_slice %160 {offsets = [32, 0], sizes = [1, 16], strides = [1, 1]} : vector<33x16xf32> to vector<1x16xf32>
    %164 = vector.broadcast %163 : vector<1x16xf32> to vector<8x16xf32>
    %165 = arith.addf %162, %164 : vector<8x16xf32>
    %cst_35 = arith.constant dense<0xFF800000> : vector<8xf32>
    %166 = vector.multi_reduction <maximumf>, %165, %cst_35 [1] : vector<8x16xf32> to vector<8xf32>
    %167 = vector.shape_cast %166 : vector<8xf32> to vector<8x1xf32>
    %168 = vector.broadcast %167 : vector<8x1xf32> to vector<8x16xf32>
    %169 = arith.subf %165, %168 : vector<8x16xf32>
    %170 = math.exp %169 : vector<8x16xf32>
    %cst_36 = arith.constant dense<0.000000e+00> : vector<8xf32>
    %171 = vector.multi_reduction <add>, %170, %cst_36 [1] : vector<8x16xf32> to vector<8xf32>
    %172 = vector.shape_cast %171 : vector<8xf32> to vector<8x1xf32>
    %173 = math.log %172 : vector<8x1xf32>
    %174 = vector.broadcast %173 : vector<8x1xf32> to vector<8x16xf32>
    %175 = arith.subf %169, %174 : vector<8x16xf32>
    %c0_37 = arith.constant 0 : index
    %c0_38 = arith.constant 0 : index
    %176 = vector.load %arg4[%c0_37, %c0_38] : memref<8x16xf32, #tpu.memory_space<vmem>>, vector<8x16xf32>
    tpu.vector_store %arg4[%c0_37, %c0_38], %175 {strides = array<i32>} : memref<8x16xf32, #tpu.memory_space<vmem>>, vector<8x16xf32>,
    %c0_39 = arith.constant 0 : index
    %c0_40 = arith.constant 0 : index
    %177 = vector.load %arg5[%c0_39, %c0_40] : memref<1x32xf32, #tpu.memory_space<vmem>>, vector<1x32xf32>
    tpu.vector_store %arg5[%c0_39, %c0_40], %158 {strides = array<i32>} : memref<1x32xf32, #tpu.memory_space<vmem>>, vector<1x32xf32>,
    %c0_41 = arith.constant 0 : index
    %c0_42 = arith.constant 0 : index
    %178 = vector.load %arg6[%c0_41, %c0_42] : memref<1x32xf32, #tpu.memory_space<vmem>>, vector<1x32xf32>
    tpu.vector_store %arg6[%c0_41, %c0_42], %156 {strides = array<i32>} : memref<1x32xf32, #tpu.memory_space<vmem>>, vector<1x32xf32>,
    return
  }
}

</mosaic_0001>

<bundles_post_ra>
// kernel: lstm_model_forward.1
= control target key start
LH: loop header
LB: loop body
LE: loop exit
PB: predicated region body
PF: predicated region fallthrough
CT: control target
= control target key end

     0   :  { %12 = vsyncpa [#allocation3], 0  ;;  %vm39_vm0 = vcmask 1043456   ;;  %v1388_v2 = vmov 0.0   ;;  %s1671_s0 = inlined_call_operand.vmem [shape: f32[8,20], index: 0, kind: input, shape index: {}]   ;;  %s1672_s1 = inlined_call_operand.vmem [shape: f32[2,32], index: 1, kind: input, shape index: {}]   ;;  %s1673_s2 = inlined_call_operand.vmem [shape: f32[53,128], index: 2, kind: input, shape index: {}]   ;;  %s1674_s3 = inlined_call_operand.vmem [shape: f32[33,16], index: 3, kind: input, shape index: {}]   ;;  %s1675_s4 = inlined_call_operand.hbm [shape: f32[8,16], index: 4, kind: output, shape index: {0}]   ;;  %s1676_s5 = inlined_call_operand.hbm [shape: f32[1,32], index: 5, kind: output, shape index: {1}]   ;;  %s1677_s6 = inlined_call_operand.hbm [shape: f32[1,32], index: 6, kind: output, shape index: {2}]  }
   0x1   :  { %v28_v0 = vld [vmem:[%s1673_s2 + $0x30] sm:$0xf]  ;;  %v1437_v1 = vld [vmem:[%s1673_s2 + $0x18] sm:$0xff]  ;;  %1172 = vmatprep.subr.mxu0 %v1388_v2  ;;  %1181 = vmatprep.subr.mxu1 %v1388_v2  ;;  %v27_v3 = vld [vmem:[%s1673_s2 + $0x28] sm:$0xff] }
   0x2   :  { %v1447_v4 = vld [vmem:[%s1673_s2 + $0x10] sm:$0xff]  ;;  %1173 = vmatpush3.msk.msra.mxu0 %vm39_vm0, %v28_v0  ;;  %1182 = vmatpush3.msra.mxu1 %v1437_v1  ;;  %v26_v5 = vld [vmem:[%s1673_s2 + $0x20] sm:$0xff] }
   0x3   :  { %1174 = vmatprep.subr.mxu0 %v1388_v2  ;;  %1183 = vmatprep.subr.mxu1 %v1388_v2 }
   0x4   :  { %13 = vsyncpa [#allocation5], 0  ;;  %1175 = vmatpush3.msra.mxu0 %v27_v3  ;;  %1184 = vmatpush3.msra.mxu1 %v1447_v4  ;;  %v1460_v6 = vld [vmem:[%s1673_s2 + $0x8] sm:$0xff]  ;;  %v30_v7 = vld [vmem:[%s1671_s0] sm:$0xff]  ;;  %vm35_vm1 = vcmask 162816   ;;  %vm1389_vm2 = vmmov 0   ;;  %v115_v17 = vlaneseq }
   0x5   :  { %1176 = vmatprep.subr.mxu0 %v1388_v2  ;;  %1185 = vmatprep.subr.mxu1 %v1388_v2  ;;  %v1472_v8 = vld [vmem:[%s1673_s2] sm:$0xff]  ;;  %vm120_vm3 = vcmask 261120   ;;  %v1110_v10 = vld [vmem:[%s1673_s2 + $0x34] ss:$0 sm:$0xff]  ;;  %s1390_s2 = smov 64   ;;  %s1391_s18 = smov 32  }
   0x6   :  { %1177 = vmatpush3.msra.mxu0 %v26_v5  ;;  %1178 = vmatprep.mubr.msk.f32.mxu0 %vm1389_vm2, %v1388_v2  ;;  %v113_v9 = vld [vmem:[%s1672_s1] sm:$0x1]  ;;  %v116_v18 = vand.u32 127, %v115_v17  ;;  %v114_v24 = vld [vmem:[%s1672_s1 + $0x1] sm:$0x1]  ;;  %vm947_vm7 = vcmask 1040384  }
   0x7   :  { %1186 = vmatpush3.msra.mxu1 %v1460_v6  ;;  %1179 = vmatmul.mubr.msk.f32.vlgmr.msra.gmra.mxu0 %vm35_vm1, %v30_v7  ;;  %vm949_vm8 = vcmask 1041408   ;;  %vm951_vm9 = vcmask 1042432   ;;  %vm954_vm10 = vcmask 1044480   ;;  %vm956_vm11 = vcmask 1045504   ;;  %v962_v21 = vld [vmem:[%s1674_s3 + $0x10] sm:$0xff]  ;;  %s1392_s28 = smov 96  }
   0x8   :  { %1187 = vmatprep.subr.mxu1 %v1388_v2  ;;  %1189 = vmatprep.mubr.msk.f32.mxu1 %vm1389_vm2, %v1388_v2  ;;  %vm117_vm4 = vcmp.ge.s32.totalorder %v116_v18, 64  ;;  %vm118_vm5 = vcmp.lt.s32.totalorder %v116_v18, 96  ;;  %vm958_vm12 = vcmask 1046528   ;;  %vm1044_vm13 = vcmask 130048   ;;  %s1394_s30 = smov [#allocation6]  }
   0x9   :  { %1188 = vmatpush3.msra.mxu1 %v1472_v8  ;;  %1192 = vmatprep.subr.mxu0 %v1388_v2  ;;  %vm1511_vm6 = vmand %vm117_vm4, %vm118_vm5  ;;  %vm1062_vm14 = vcmask 261127   ;;  %s1095_s7 = sshll.u32 %s1394_s30, 4  ;;  %s1096_s7 = int_to_ptr.vmem [resolvable:$true] %s1095_s7 }
   0xa   :  { %1190 = vmatmul.mubr.msk.f32.vlgmr.msra.gmra.mxu1 %vm120_vm3, %v113_v9  ;;  %1193 = vmatpush3.msra.mxu0 %v1437_v1 }
   0xb   :  { %1194 = vmatprep.subr.mxu0 %v1388_v2  ;;  %1200 = vmatprep.mubr.msk.f32.mxu0 %vm1389_vm2, %v1388_v2 }
   0xc   :  { %1195 = vmatpush3.msra.mxu0 %v1447_v4  ;;  %1203 = vmatprep.subr.mxu1 %v1388_v2 }
   0xd   :  { %1196 = vmatprep.subr.mxu0 %v1388_v2  ;;  %1204 = vmatpush3.msra.mxu1 %v1437_v1 }
   0xe   :  { %1197 = vmatpush3.msra.mxu0 %v1460_v6  ;;  %1205 = vmatprep.subr.mxu1 %v1388_v2 }
   0xf   :  { %1198 = vmatprep.subr.mxu0 %v1388_v2  ;;  %1206 = vmatpush3.msra.mxu1 %v1447_v4 }
  0x10   :  { %1199 = vmatpush3.msra.mxu0 %v1472_v8  ;;  %1207 = vmatprep.subr.mxu1 %v1388_v2 }
  0x11   :  { %1208 = vmatpush3.msra.mxu1 %v1460_v6  ;;  %1211 = vmatprep.mubr.msk.f32.mxu1 %vm1389_vm2, %v1388_v2 }
  0x12   :  { %1209 = vmatprep.subr.mxu1 %v1388_v2  ;;  %1214 = vmatprep.subr.mxu0 %v1388_v2 }
  0x13   :  { %1210 = vmatpush3.msra.mxu1 %v1472_v8 }
  0x14   :  { %1225 = vmatprep.subr.mxu1 %v1388_v2 }
  0xc7   :  { %v109_v11 = vpop.f32.mrf.mxu0 }
  0xc8   :  { %v1508_v12 = vadd.f32 %v1110_v10, %v109_v11 }
  0xc9   :  { %v1180_v13 = vpop.f32.mrf.mxu0 }
  0xca   :  { %v190_v14 = vpop.f32.mrf.mxu1 }
  0xcb   :  { %v194_v15 = vadd.f32 %v190_v14, %v1508_v12 }
  0xcc   :  { %v1191_v16 = vpop.f32.mrf.mxu1 }
  0xcd   :  { %1288 = vtanh.f32 %v194_v15 }
  0xda   :  { %v1289_v19 = vpop.eup %1288 }
  0xdb   :  { %v196_v20 = vmul.f32 0.5, %v1289_v19 }
  0xdd   :  { %v197_v22 = vadd.f32 0.5, %v196_v20 }
  0xdf   :  { %v198_v23 = vsel %vm1511_vm6, %v1289_v19, %v197_v22 }
  0xe0   :  { %205 = vrot.lane.b32.xlu0 %v198_v23, %s1390_s2 }
  0xe4   :  { %200 = vrot.lane.b32.xlu0 %v114_v24, %s1391_s18 }
 0x152   :  { %v206_v25 = vpop.permute.xlu0 %205 }
 0x153   :  { %v208_v26 = vmul.f32 %v206_v25, %v198_v23 }
 0x155   :  { %210 = vrot.lane.b32.xlu1 %v208_v26, %s1391_s18 }
 0x156   :  { %v201_v27 = vpop.permute.xlu0 %200 }
 0x157   :  { %v203_v28 = vmul.f32 %v201_v27, %v198_v23 }
 0x1c7   :  { %v211_v29 = vpop.permute.xlu1 %210 }
 0x1c8   :  { %v213_v30 = vadd.f32 %v211_v29, %v203_v28 }
 0x1ca   :  { %1290 = vtanh.f32 %v213_v30  ;;  %v304_v45 = vrot.slane %v213_v30, 7 }
 0x1d7   :  { %v1291_v31 = vpop.eup %1290 }
 0x1d8   :  { %216 = vrot.lane.b32.xlu1 %v1291_v31, %s1390_s2 }
 0x24a   :  { %v217_v32 = vpop.permute.xlu1 %216 }
 0x24b   :  { %v1524_v33 = vmul.f32 %v217_v32, %v198_v23 }
 0x24d   :  { %221 = vrot.lane.b32.xlu0 %v1524_v33, %s1391_s18 }
 0x2bf   :  { %v222_v34 = vpop.permute.xlu0 %221 }
 0x2c0   :  { %1201 = vmatmul.mubr.msk.f32.vlgmr.msra.gmra.mxu0 %vm120_vm3, %v222_v34 }
 0x2c1   :  { %1215 = vmatpush3.msra.mxu0 %v1437_v1  ;;  %1222 = vmatprep.mubr.msk.f32.mxu0 %vm1389_vm2, %v1388_v2 }
 0x2c2   :  { %1216 = vmatprep.subr.mxu0 %v1388_v2 }
 0x2c3   :  { %1217 = vmatpush3.msra.mxu0 %v1447_v4 }
 0x2c4   :  { %1218 = vmatprep.subr.mxu0 %v1388_v2 }
 0x2c5   :  { %1219 = vmatpush3.msra.mxu0 %v1460_v6 }
 0x2c6   :  { %1220 = vmatprep.subr.mxu0 %v1388_v2 }
 0x2c7   :  { %1221 = vmatpush3.msra.mxu0 %v1472_v8 }
 0x2c8   :  { %1236 = vmatprep.subr.mxu0 %v1388_v2 }
 0x380   :  { %v291_v35 = vpop.f32.mrf.mxu0 }
 0x381   :  { %v296_v36 = vrot.slane %v291_v35, 7 }
 0x382   :  { %v1202_v37 = vpop.f32.mrf.mxu0 }
 0x383   :  { %v298_v38 = vadd.f32 %v296_v36, %v1508_v12 }
 0x385   :  { %1292 = vtanh.f32 %v298_v38 }
 0x392   :  { %v1293_v39 = vpop.eup %1292 }
 0x393   :  { %v300_v40 = vmul.f32 0.5, %v1293_v39 }
 0x395   :  { %v301_v41 = vadd.f32 0.5, %v300_v40 }
 0x397   :  { %v302_v42 = vsel %vm1511_vm6, %v1293_v39, %v301_v41 }
 0x398   :  { %308 = vrot.lane.b32.xlu1 %v302_v42, %s1390_s2  ;;  %v306_v46 = vmul.f32 %v304_v45, %v302_v42 }
 0x40a   :  { %v309_v43 = vpop.permute.xlu1 %308 }
 0x40b   :  { %v311_v44 = vmul.f32 %v309_v43, %v302_v42 }
 0x40d   :  { %313 = vrot.lane.b32.xlu0 %v311_v44, %s1391_s18 }
 0x47f   :  { %v314_v47 = vpop.permute.xlu0 %313 }
 0x480   :  { %v316_v48 = vadd.f32 %v314_v47, %v306_v46 }
 0x482   :  { %1294 = vtanh.f32 %v316_v48  ;;  %v408_v0 = vrot.slane %v316_v48, 7 }
 0x48f   :  { %v1295_v49 = vpop.eup %1294 }
 0x490   :  { %319 = vrot.lane.b32.xlu1 %v1295_v49, %s1390_s2 }
 0x502   :  { %v320_v50 = vpop.permute.xlu1 %319 }
 0x503   :  { %v322_v51 = vmul.f32 %v320_v50, %v302_v42 }
 0x505   :  { %v324_v52 = vrot.slane %v322_v51, 1  ;;  %v948_v13 = vsel %vm947_vm7, %v1524_v33, %v322_v51 }
 0x507   :  { %325 = vrot.lane.b32.xlu0 %v324_v52, %s1391_s18 }
 0x579   :  { %v326_v53 = vpop.permute.xlu0 %325 }
 0x57a   :  { %1212 = vmatmul.mubr.msk.f32.vlgmr.msra.gmra.mxu1 %vm120_vm3, %v326_v53 }
 0x57b   :  { %1226 = vmatpush3.msra.mxu1 %v1437_v1  ;;  %1233 = vmatprep.mubr.msk.f32.mxu1 %vm1389_vm2, %v1388_v2 }
 0x57c   :  { %1227 = vmatprep.subr.mxu1 %v1388_v2 }
 0x57d   :  { %1228 = vmatpush3.msra.mxu1 %v1447_v4 }
 0x57e   :  { %1229 = vmatprep.subr.mxu1 %v1388_v2 }
 0x57f   :  { %1230 = vmatpush3.msra.mxu1 %v1460_v6 }
 0x580   :  { %1231 = vmatprep.subr.mxu1 %v1388_v2 }
 0x581   :  { %1232 = vmatpush3.msra.mxu1 %v1472_v8 }
 0x582   :  { %1247 = vmatprep.subr.mxu1 %v1388_v2 }
 0x63a   :  { %v395_v54 = vpop.f32.mrf.mxu1 }
 0x63b   :  { %v400_v55 = vrot.slane %v395_v54, 6 }
 0x63c   :  { %v1213_v56 = vpop.f32.mrf.mxu1 }
 0x63d   :  { %v402_v57 = vadd.f32 %v400_v55, %v1508_v12 }
 0x63f   :  { %1296 = vtanh.f32 %v402_v57 }
 0x64c   :  { %v1297_v58 = vpop.eup %1296 }
 0x64d   :  { %v404_v59 = vmul.f32 0.5, %v1297_v58 }
 0x64f   :  { %v405_v60 = vadd.f32 0.5, %v404_v59 }
 0x651   :  { %v406_v61 = vsel %vm1511_vm6, %v1297_v58, %v405_v60 }
 0x652   :  { %412 = vrot.lane.b32.xlu1 %v406_v61, %s1390_s2  ;;  %v410_v3 = vmul.f32 %v408_v0, %v406_v61 }
 0x6c4   :  { %v413_v62 = vpop.permute.xlu1 %412 }
 0x6c5   :  { %v415_v63 = vmul.f32 %v413_v62, %v406_v61 }
 0x6c7   :  { %417 = vrot.lane.b32.xlu0 %v415_v63, %s1391_s18 }
 0x739   :  { %v418_v5 = vpop.permute.xlu0 %417 }
 0x73a   :  { %v420_v7 = vadd.f32 %v418_v5, %v410_v3 }
 0x73c   :  { %1298 = vtanh.f32 %v420_v7  ;;  %v512_v28 = vrot.slane %v420_v7, 7 }
 0x749   :  { %v1299_v9 = vpop.eup %1298 }
 0x74a   :  { %423 = vrot.lane.b32.xlu1 %v1299_v9, %s1390_s2 }
 0x7bc   :  { %v424_v10 = vpop.permute.xlu1 %423 }
 0x7bd   :  { %v426_v11 = vmul.f32 %v424_v10, %v406_v61 }
 0x7bf   :  { %v428_v14 = vrot.slane %v426_v11, 2  ;;  %v950_v15 = vsel %vm949_vm8, %v948_v13, %v426_v11 }
 0x7c1   :  { %429 = vrot.lane.b32.xlu0 %v428_v14, %s1391_s18 }
 0x833   :  { %v430_v16 = vpop.permute.xlu0 %429 }
 0x834   :  { %1223 = vmatmul.mubr.msk.f32.vlgmr.msra.gmra.mxu0 %vm120_vm3, %v430_v16 }
 0x835   :  { %1237 = vmatpush3.msra.mxu0 %v1437_v1  ;;  %1244 = vmatprep.mubr.msk.f32.mxu0 %vm1389_vm2, %v1388_v2 }
 0x836   :  { %1238 = vmatprep.subr.mxu0 %v1388_v2 }
 0x837   :  { %1239 = vmatpush3.msra.mxu0 %v1447_v4 }
 0x838   :  { %1240 = vmatprep.subr.mxu0 %v1388_v2 }
 0x839   :  { %1241 = vmatpush3.msra.mxu0 %v1460_v6 }
 0x83a   :  { %1242 = vmatprep.subr.mxu0 %v1388_v2 }
 0x83b   :  { %1243 = vmatpush3.msra.mxu0 %v1472_v8 }
 0x83c   :  { %1258 = vmatprep.subr.mxu0 %v1388_v2 }
 0x8f4   :  { %v499_v17 = vpop.f32.mrf.mxu0 }
 0x8f5   :  { %v504_v18 = vrot.slane %v499_v17, 5 }
 0x8f6   :  { %v1224_v19 = vpop.f32.mrf.mxu0 }
 0x8f7   :  { %v506_v20 = vadd.f32 %v504_v18, %v1508_v12 }
 0x8f9   :  { %1300 = vtanh.f32 %v506_v20 }
 0x906   :  { %v1301_v22 = vpop.eup %1300 }
 0x907   :  { %v508_v23 = vmul.f32 0.5, %v1301_v22 }
 0x909   :  { %v509_v24 = vadd.f32 0.5, %v508_v23 }
 0x90b   :  { %v510_v25 = vsel %vm1511_vm6, %v1301_v22, %v509_v24 }
 0x90c   :  { %516 = vrot.lane.b32.xlu1 %v510_v25, %s1390_s2  ;;  %v514_v29 = vmul.f32 %v512_v28, %v510_v25 }
 0x97e   :  { %v517_v26 = vpop.permute.xlu1 %516 }
 0x97f   :  { %v519_v27 = vmul.f32 %v517_v26, %v510_v25 }
 0x981   :  { %521 = vrot.lane.b32.xlu0 %v519_v27, %s1391_s18 }
 0x9f3   :  { %v522_v30 = vpop.permute.xlu0 %521 }
 0x9f4   :  { %v524_v31 = vadd.f32 %v522_v30, %v514_v29 }
 0x9f6   :  { %1302 = vtanh.f32 %v524_v31  ;;  %v616_v48 = vrot.slane %v524_v31, 7 }
 0xa03   :  { %v1303_v32 = vpop.eup %1302 }
 0xa04   :  { %527 = vrot.lane.b32.xlu1 %v1303_v32, %s1390_s2 }
 0xa76   :  { %v528_v33 = vpop.permute.xlu1 %527 }
 0xa77   :  { %v530_v34 = vmul.f32 %v528_v33, %v510_v25 }
 0xa79   :  { %v532_v35 = vrot.slane %v530_v34, 3  ;;  %v952_v36 = vsel %vm951_vm9, %v950_v15, %v530_v34 }
 0xa7b   :  { %533 = vrot.lane.b32.xlu0 %v532_v35, %s1391_s18 }
 0xaed   :  { %v534_v37 = vpop.permute.xlu0 %533 }
 0xaee   :  { %1234 = vmatmul.mubr.msk.f32.vlgmr.msra.gmra.mxu1 %vm120_vm3, %v534_v37 }
 0xaef   :  { %1248 = vmatpush3.msra.mxu1 %v1437_v1  ;;  %1255 = vmatprep.mubr.msk.f32.mxu1 %vm1389_vm2, %v1388_v2 }
 0xaf0   :  { %1249 = vmatprep.subr.mxu1 %v1388_v2 }
 0xaf1   :  { %1250 = vmatpush3.msra.mxu1 %v1447_v4 }
 0xaf2   :  { %1251 = vmatprep.subr.mxu1 %v1388_v2 }
 0xaf3   :  { %1252 = vmatpush3.msra.mxu1 %v1460_v6 }
 0xaf4   :  { %1253 = vmatprep.subr.mxu1 %v1388_v2 }
 0xaf5   :  { %1254 = vmatpush3.msra.mxu1 %v1472_v8 }
 0xaf6   :  { %1269 = vmatprep.subr.mxu1 %v1388_v2 }
 0xbae   :  { %v603_v38 = vpop.f32.mrf.mxu1 }
 0xbaf   :  { %v608_v39 = vrot.slane %v603_v38, 4 }
 0xbb0   :  { %v1235_v40 = vpop.f32.mrf.mxu1 }
 0xbb1   :  { %v610_v41 = vadd.f32 %v608_v39, %v1508_v12 }
 0xbb3   :  { %1304 = vtanh.f32 %v610_v41 }
 0xbc0   :  { %v1305_v42 = vpop.eup %1304 }
 0xbc1   :  { %v612_v43 = vmul.f32 0.5, %v1305_v42 }
 0xbc3   :  { %v613_v44 = vadd.f32 0.5, %v612_v43 }
 0xbc5   :  { %v614_v45 = vsel %vm1511_vm6, %v1305_v42, %v613_v44 }
 0xbc6   :  { %620 = vrot.lane.b32.xlu1 %v614_v45, %s1390_s2  ;;  %v618_v49 = vmul.f32 %v616_v48, %v614_v45 }
 0xc38   :  { %v621_v46 = vpop.permute.xlu1 %620 }
 0xc39   :  { %v623_v47 = vmul.f32 %v621_v46, %v614_v45 }
 0xc3b   :  { %625 = vrot.lane.b32.xlu0 %v623_v47, %s1391_s18 }
 0xcad   :  { %v626_v50 = vpop.permute.xlu0 %625 }
 0xcae   :  { %v628_v51 = vadd.f32 %v626_v50, %v618_v49 }
 0xcb0   :  { %1306 = vtanh.f32 %v628_v51  ;;  %v720_v3 = vrot.slane %v628_v51, 7  ;;  %v961_v51 = vld [vmem:[%s1674_s3 + $0x8] sm:$0xff] }
 0xcbd   :  { %v1307_v52 = vpop.eup %1306 }
 0xcbe   :  { %631 = vrot.lane.b32.xlu1 %v1307_v52, %s1390_s2  ;;  %v960_v52 = vld [vmem:[%s1674_s3] sm:$0xff] }
 0xd30   :  { %v632_v53 = vpop.permute.xlu1 %631 }
 0xd31   :  { %v634_v54 = vmul.f32 %v632_v53, %v614_v45 }
 0xd33   :  { %v636_v55 = vrot.slane %v634_v54, 4  ;;  %v953_v56 = vsel %vm39_vm0, %v952_v36, %v634_v54 }
 0xd35   :  { %637 = vrot.lane.b32.xlu0 %v636_v55, %s1391_s18 }
 0xda7   :  { %v638_v57 = vpop.permute.xlu0 %637 }
 0xda8   :  { %1245 = vmatmul.mubr.msk.f32.vlgmr.msra.gmra.mxu0 %vm120_vm3, %v638_v57 }
 0xda9   :  { %1259 = vmatpush3.msra.mxu0 %v1437_v1  ;;  %1266 = vmatprep.mubr.msk.f32.mxu0 %vm1389_vm2, %v1388_v2 }
 0xdaa   :  { %1260 = vmatprep.subr.mxu0 %v1388_v2 }
 0xdab   :  { %1261 = vmatpush3.msra.mxu0 %v1447_v4 }
 0xdac   :  { %1262 = vmatprep.subr.mxu0 %v1388_v2 }
 0xdad   :  { %1263 = vmatpush3.msra.mxu0 %v1460_v6 }
 0xdae   :  { %1264 = vmatprep.subr.mxu0 %v1388_v2 }
 0xdaf   :  { %1265 = vmatpush3.msra.mxu0 %v1472_v8 }
 0xe68   :  { %v707_v58 = vpop.f32.mrf.mxu0 }
 0xe69   :  { %v712_v59 = vrot.slane %v707_v58, 3  ;;  %v1121_v58 = vld [vmem:[%s1674_s3 + $0x20] ss:$0 sm:$0xff] }
 0xe6a   :  { %v1246_v60 = vpop.f32.mrf.mxu0 }
 0xe6b   :  { %v714_v1 = vadd.f32 %v712_v59, %v1508_v12 }
 0xe6d   :  { %1308 = vtanh.f32 %v714_v1 }
 0xe7a   :  { %v1309_v61 = vpop.eup %1308 }
 0xe7b   :  { %v716_v62 = vmul.f32 0.5, %v1309_v61 }
 0xe7d   :  { %v717_v63 = vadd.f32 0.5, %v716_v62 }
 0xe7f   :  { %v718_v4 = vsel %vm1511_vm6, %v1309_v61, %v717_v63 }
 0xe80   :  { %724 = vrot.lane.b32.xlu1 %v718_v4, %s1390_s2  ;;  %v722_v8 = vmul.f32 %v720_v3, %v718_v4 }
 0xef2   :  { %v725_v0 = vpop.permute.xlu1 %724 }
 0xef3   :  { %v727_v6 = vmul.f32 %v725_v0, %v718_v4 }
 0xef5   :  { %729 = vrot.lane.b32.xlu0 %v727_v6, %s1391_s18 }
 0xf67   :  { %v730_v5 = vpop.permute.xlu0 %729 }
 0xf68   :  { %v732_v7 = vadd.f32 %v730_v5, %v722_v8 }
 0xf6a   :  { %1310 = vtanh.f32 %v732_v7  ;;  %v824_v27 = vrot.slane %v732_v7, 7 }
 0xf77   :  { %v1311_v9 = vpop.eup %1310 }
 0xf78   :  { %735 = vrot.lane.b32.xlu1 %v1311_v9, %s1390_s2 }
 0xfea   :  { %v736_v10 = vpop.permute.xlu1 %735 }
 0xfeb   :  { %v738_v11 = vmul.f32 %v736_v10, %v718_v4 }
 0xfed   :  { %v740_v13 = vrot.slane %v738_v11, 5  ;;  %v955_v14 = vsel %vm954_vm10, %v953_v56, %v738_v11 }
 0xfef   :  { %741 = vrot.lane.b32.xlu0 %v740_v13, %s1391_s18 }
0x1061   :  { %v742_v15 = vpop.permute.xlu0 %741 }
0x1062   :  { %1256 = vmatmul.mubr.msk.f32.vlgmr.msra.gmra.mxu1 %vm120_vm3, %v742_v15 }
0x1063   :  { %1277 = vmatprep.mubr.msk.f32.mxu1 %vm1389_vm2, %v1388_v2 }
0x1122   :  { %v811_v16 = vpop.f32.mrf.mxu1 }
0x1123   :  { %v816_v17 = vrot.slane %v811_v16, 2 }
0x1124   :  { %v1257_v18 = vpop.f32.mrf.mxu1 }
0x1125   :  { %v818_v19 = vadd.f32 %v816_v17, %v1508_v12 }
0x1127   :  { %1312 = vtanh.f32 %v818_v19 }
0x1134   :  { %v1313_v20 = vpop.eup %1312 }
0x1135   :  { %v820_v22 = vmul.f32 0.5, %v1313_v20 }
0x1137   :  { %v821_v23 = vadd.f32 0.5, %v820_v22 }
0x1139   :  { %v822_v24 = vsel %vm1511_vm6, %v1313_v20, %v821_v23 }
0x113a   :  { %828 = vrot.lane.b32.xlu1 %v822_v24, %s1390_s2  ;;  %v826_v28 = vmul.f32 %v824_v27, %v822_v24 }
0x11ac   :  { %v829_v25 = vpop.permute.xlu1 %828 }
0x11ad   :  { %v831_v26 = vmul.f32 %v829_v25, %v822_v24 }
0x11af   :  { %833 = vrot.lane.b32.xlu0 %v831_v26, %s1391_s18 }
0x1221   :  { %v834_v29 = vpop.permute.xlu0 %833 }
0x1222   :  { %v836_v30 = vadd.f32 %v834_v29, %v826_v28 }
0x1224   :  { %1314 = vtanh.f32 %v836_v30  ;;  %v928_v47 = vrot.slane %v836_v30, 7 }
0x1231   :  { %v1315_v31 = vpop.eup %1314 }
0x1232   :  { %839 = vrot.lane.b32.xlu1 %v1315_v31, %s1390_s2 }
0x12a4   :  { %v840_v32 = vpop.permute.xlu1 %839 }
0x12a5   :  { %v842_v33 = vmul.f32 %v840_v32, %v822_v24 }
0x12a7   :  { %v844_v34 = vrot.slane %v842_v33, 6  ;;  %v957_v35 = vsel %vm956_vm11, %v955_v14, %v842_v33 }
0x12a9   :  { %845 = vrot.lane.b32.xlu0 %v844_v34, %s1391_s18 }
0x131b   :  { %v846_v36 = vpop.permute.xlu0 %845 }
0x131c   :  { %1267 = vmatmul.mubr.msk.f32.vlgmr.msra.gmra.mxu0 %vm120_vm3, %v846_v36 }
0x13dc   :  { %v915_v37 = vpop.f32.mrf.mxu0 }
0x13dd   :  { %v920_v38 = vrot.slane %v915_v37, 1 }
0x13de   :  { %v1268_v39 = vpop.f32.mrf.mxu0 }
0x13df   :  { %v922_v40 = vadd.f32 %v920_v38, %v1508_v12  ;;  %v963_v12 = vld [vmem:[%s1674_s3 + $0x18] sm:$0xff]  ;;  %s1393_s3 = smov [#allocation4]  }
0x13e0   :  { %1270 = vmatpush3.msra.mxu1 %v963_v12  ;;  %s1085_s29 = sshll.u32 %s1393_s3, 4  ;;  %s1086_s29 = int_to_ptr.vmem [resolvable:$true] %s1085_s29 }
0x13e1   :  { %1316 = vtanh.f32 %v922_v40  ;;  %1271 = vmatprep.subr.mxu1 %v1388_v2  ;;  %s1324_s8 = scalar_lea.vmem %s1086_s29, 16  ;;  %s1328_s9 = scalar_lea.vmem %s1086_s29, 32 }
0x13e2   :  { %1272 = vmatpush3.msra.mxu1 %v962_v21  ;;  %p1325_p0 = scmp.ne.s32.totalorder %s1086_s29, %s1324_s8  ;;  %p1329_p1 = scmp.lt.s32.totalorder %s1086_s29, %s1086_s29 }
0x13e3   :  { %1273 = vmatprep.subr.mxu1 %v1388_v2  ;;  %p1330_p2 = scmp.lt.s32.totalorder %s1328_s9, %s1324_s8 }
0x13e4   :  { %1274 = vmatpush3.msra.mxu1 %v961_v51 }
0x13e5   :  { %1275 = vmatprep.subr.mxu1 %v1388_v2  ;;  %p1331_p3 = por %p1330_p2, %p1329_p1 }
0x13e6   :  { %1276 = vmatpush3.msra.mxu1 %v960_v52 }
0x13e7   :  { %p1332_p4 = pnand %p1331_p3, %p1325_p0 }
0x13ee   :  { %v1317_v41 = vpop.eup %1316 }
0x13ef   :  { %v924_v42 = vmul.f32 0.5, %v1317_v41 }
0x13f1   :  { %v925_v43 = vadd.f32 0.5, %v924_v42 }
0x13f3   :  { %v926_v44 = vsel %vm1511_vm6, %v1317_v41, %v925_v43 }
0x13f4   :  { %932 = vrot.lane.b32.xlu1 %v926_v44, %s1390_s2  ;;  %v930_v48 = vmul.f32 %v928_v47, %v926_v44 }
0x1466   :  { %v933_v45 = vpop.permute.xlu1 %932 }
0x1467   :  { %v935_v46 = vmul.f32 %v933_v45, %v926_v44 }
0x1469   :  { %937 = vrot.lane.b32.xlu0 %v935_v46, %s1391_s18 }
0x14db   :  { %v938_v49 = vpop.permute.xlu0 %937 }
0x14dc   :  { %v940_v50 = vadd.f32 %v938_v49, %v930_v48 }
0x14de   :  { %1318 = vtanh.f32 %v940_v50 }
0x14eb   :  { %v1319_v53 = vpop.eup %1318 }
0x14ec   :  { %943 = vrot.lane.b32.xlu1 %v1319_v53, %s1390_s2 }
0x155e   :  { %v944_v54 = vpop.permute.xlu1 %943 }
0x155f   :  { %v946_v55 = vmul.f32 %v944_v54, %v926_v44 }
0x1561   :  { %v959_v56 = vsel %vm958_vm12, %v957_v35, %v946_v55 }
0x1562   :  { %970 = vrot.lane.b32.xlu0 %v959_v56, %s1391_s18 }
0x15d4   :  { %v971_v57 = vpop.permute.xlu0 %970 }
0x15d5   :  { %1278 = vmatmul.mubr.msk.f32.vlgmr.msra.gmra.mxu1 %vm120_vm3, %v971_v57 }
0x1695   :  { %v1040_v59 = vpop.f32.mrf.mxu1 }
0x1696   :  { %v1041_v2 = vadd.f32 %v1121_v58, %v1040_v59 }
0x1697   :  { %v1279_v60 = vpop.f32.mrf.mxu1 }
0x1698   :  { %v1045_v1 = vsel %vm1044_vm13, %v1041_v2, -inf }
0x1699   :  { %1046 = vmax.xlane.f32.xlu1 %v1045_v1 }
0x16aa   :  { %1065 = vrot.lane.b32.xlu1 %v940_v50, %s1392_s28 }
0x1722   :  { %v1047_v61 = vpop.xlane.xlu1 %1046 }
0x1723   :  { %v1048_v62 = vsub.f32 %v1041_v2, %v1047_v61 }
0x1725   :  { %v1049_v63 = vmul.f32 1.442695, %v1048_v62 }
0x1726   :  { %v1066_v4 = vpop.permute.xlu1 %1065 }
0x1727   :  { %1320 = vpow2.f32 %v1049_v63  ;;  %1068 = vst.msk [vmem:[#allocation6 - $0x7] sm:$0x80] %vm1062_vm14, %v1066_v4 }
0x1734   :  { %v1321_v0 = vpop.eup %1320 }
0x1735   :  { %v1051_v6 = vsel %vm1044_vm13, %v1321_v0, 0.0 }
0x1736   :  { %1052 = vadd.xlane.f32.xlu0 %v1051_v6 }
0x174c   :  { %1059 = vrot.lane.b32.xlu0 %v946_v55, %s1391_s18 }
0x17bf   :  { %v1053_v3 = vpop.xlane.xlu0 %1052 }
0x17c0   :  { %1322 = vlog2.f32 %v1053_v3 }
0x17c3   :  { %v1060_v8 = vpop.permute.xlu0 %1059 }
0x17c4   :  { %1063 = vst.msk [vmem:[#allocation4 - $0x7] sm:$0x80] %vm1062_vm14, %v1060_v8 }
0x17c5   :  { %1335 = shalt.err (!%p1332_p4)
}
0x17c6   :  { %1088 = dma.vmem_to_hbm [thread:$0]  %s1086_s29, 16, %s1676_s5, [#allocation5]  }
0x17c7   :  { %s1344_s12 = scalar_lea.vmem %s1096_s7, 16  ;;  %s1348_s13 = scalar_lea.vmem %s1096_s7, 32 }
0x17c8   :  { %p1345_p5 = scmp.ne.s32.totalorder %s1096_s7, %s1344_s12  ;;  %p1349_p6 = scmp.lt.s32.totalorder %s1096_s7, %s1096_s7 }
0x17c9   :  { %p1350_p7 = scmp.lt.s32.totalorder %s1348_s13, %s1344_s12 }
0x17cb   :  { %p1351_p8 = por %p1350_p7, %p1349_p6 }
0x17cd   :  { %p1352_p9 = pnand %p1351_p8, %p1345_p5 }
0x17cf   :  { %1355 = shalt.err (!%p1352_p9)
}
0x17d0   :  { %1098 = dma.vmem_to_hbm [thread:$0]  %s1096_s7, 16, %s1677_s6, [#allocation5]   ;;  %v1323_v5 = vpop.eup %1322 }
0x17d1   :  { %s1395_s15 = smov [#allocation2]   ;;  %v1055_v7 = vmul.f32 0.6931472, %v1323_v5 }
0x17d2   :  { %s1075_s2 = sshll.u32 %s1395_s15, 4  ;;  %s1076_s2 = int_to_ptr.vmem [resolvable:$true] %s1075_s2 }
0x17d3   :  { %v1056_v9 = vsub.f32 %v1048_v62, %v1055_v7  ;;  %s1364_s5 = scalar_lea.vmem %s1076_s2, 128  ;;  %p1369_p11 = scmp.lt.s32.totalorder %s1076_s2, %s1076_s2 }
0x17d4   :  { %p1365_p10 = scmp.ne.s32.totalorder %s1076_s2, %s1364_s5  ;;  %p1370_p12 = scmp.lt.s32.totalorder %s1364_s5, %s1364_s5 }
0x17d5   :  { %1057 = vst.msk [vmem:[#allocation2] sm:$0xff] %vm1044_vm13, %v1056_v9 }
0x17d6   :  { %p1371_p13 = por %p1370_p12, %p1369_p11 }
0x17d8   :  { %p1372_p0 = pnand %p1371_p13, %p1365_p10 }
0x17da   :  { %1375 = shalt.err (!%p1372_p0)
}
0x17db   :  { %1078 = dma.vmem_to_hbm [thread:$0]  %s1076_s2, 128, %s1675_s4, [#allocation3]  }
0x17dc   :  { %1384 = dma.done.wait [#allocation3], 128  }
0x17dd   :  { %1385 = vsyncadd [#allocation3], 4294967168 }
0x17de   :  { %1386 = dma.done.wait [#allocation5], 32  }
0x17df   :  { %1387 = vsyncadd [#allocation5], 4294967264 }
0x17e0   :  { %1108 = vsyncpa [#allocation3], 1 }
0x17e1   :  { %1109 = vsyncpa [#allocation5], 1 }

</bundles_post_ra>
